<compile_context>
chip_gen: v7x
topology: tpu7x:2x2x1
jax: 0.10.0
libtpu: 0.0.40
codegen_flags: <defaults>
</compile_context>

<pallas_src>
import functools

import jax
import jax.numpy as jnp
import numpy as np
from jax.experimental import pallas as pl
from jax.experimental.pallas import tpu as pltpu


def _stja_kernel(x_ref, pool_ref, rt_ref, rv_ref, w1b_ref, b1b_ref,
                 wtvb_ref, btvb_ref, s2b_ref, h2b_ref, o_ref,
                 *, Nb, C, T, V):
    TV = T * V
    NbC = Nb * C

    # (Nb, C, TV) -> (Nb*C, TV): merges leading dims only; lane dim untouched.
    x = x_ref[...].reshape(NbC, TV)

    # 1) Both mean pools in one lane-dense matmul:
    #    m[:, :T] = mean over V (per frame), m[:, T:] = mean over T (per joint).
    m = jnp.dot(x, pool_ref[...], preferred_element_type=jnp.float32)      # (NbC, T+V)

    # 2) fcn: Conv2d(C->inner, 1x1) + folded BatchNorm + Hardswish,
    #    batched over samples via a block-diagonal weight.
    y = jnp.dot(w1b_ref[...], m, preferred_element_type=jnp.float32) + b1b_ref[...]
    y = y * jnp.clip(y + 3.0, 0.0, 6.0) * (1.0 / 6.0)                      # (Nb*inner, T+V)

    # 3) conv_t / conv_v stacked + block-diagonal over samples, one matmul +
    #    sigmoid.  Each row block only "owns" part of the T+V columns; the
    #    unused halves are zeroed out by the expansion matmuls below.
    z = jax.nn.sigmoid(
        jnp.dot(wtvb_ref[...], y, preferred_element_type=jnp.float32)
        + btvb_ref[...])                                                   # (2*NbC, T+V)

    # 4)/5) att[(n,c), t*V+v] = z_t[(n,c), t] * z_v[(n,c), T+v], built
    #    directly lane-dense with two 0/1 expansion matmuls (no reshape /
    #    repeat / transpose).  The split of z is a sublane slice at a
    #    tile-aligned (multiple-of-8) boundary.
    zc = z.astype(rt_ref.dtype)
    att = (jnp.dot(zc[:NbC, :], rt_ref[...], preferred_element_type=jnp.float32) *
           jnp.dot(zc[NbC:, :], rv_ref[...], preferred_element_type=jnp.float32))  # (NbC, TV)

    # Epilogue on the whole block: x*att, folded outer BatchNorm (eval),
    # residual, ReLU -> one contiguous unmasked store.
    xf = x.astype(jnp.float32)
    bn = (xf * att) * s2b_ref[...] + h2b_ref[...]
    o_ref[...] = jnp.maximum(bn + xf, 0.0).reshape(Nb, C, TV).astype(o_ref.dtype)


def _pick_nb(N, C, TV, itemsize):
    """Largest divisor of N that fits the VMEM budget and the compute cap.

    No ">= 2 grid steps" rule: for small N we want ONE big block (per-step
    overhead amortization); for large N there are plenty of grid steps for
    the two v7x TensorCores via dimension_semantics=('parallel',).
    """
    try:
        vmem_bytes = pltpu.get_tpu_info().vmem_capacity_bytes
    except Exception:
        vmem_bytes = 64 << 20   # conservative (v7x per-TC physical)
    # Budget for the pipelined data blocks (in + out, double-buffered),
    # leaving most of VMEM for constants / headroom.
    data_budget = max(vmem_bytes // 8, 2 << 20)
    cap_mem = max(1, data_budget // (4 * C * TV * itemsize))
    # Keep the block-diagonal middle-stage matmuls (cost ~ Nb^2) well below
    # the HBM time of the block (cost ~ Nb).
    cap_compute = 32
    cap = max(1, min(cap_mem, cap_compute, N))
    nb = 1
    # TODO(synk): a prime N degrades to Nb=1; pad / cdiv-grid if that matters.
    for d in range(1, N + 1):
        if N % d == 0 and d <= cap:
            nb = d
    return nb


def attention_layer_stja(x, params):
    N, C, T, V = x.shape
    TV = T * V
    inner = params["w1"].shape[0]

    # Matmul-operand dtype: keep bf16 end-to-end on the big operands if the
    # input is bf16 (f32 accumulation via preferred_element_type).
    mat_dtype = jnp.bfloat16 if x.dtype == jnp.bfloat16 else jnp.float32

    Nb = _pick_nb(N, C, TV, x.dtype.itemsize)
    grid = (N // Nb,)

    # ---- fold the fcn BatchNorm into the 1x1 conv ----
    w1f = params["s1"] * params["w1"]                        # (inner, C)
    b1f = params["s1"] * params["b1"] + params["h1"]         # (inner, 1)

    # ---- block-diagonal (over samples) weights + tiled bias/scale slabs ----
    eye = jnp.eye(Nb, dtype=jnp.float32)
    w1b = jnp.kron(eye, w1f)                                 # (Nb*inner, Nb*C)
    wtvb = jnp.concatenate([jnp.kron(eye, params["wt"]),
                            jnp.kron(eye, params["wv"])], axis=0)  # (2*Nb*C, Nb*inner)
    b1b = jnp.tile(b1f, (Nb, 1))                             # (Nb*inner, 1)
    btvb = jnp.concatenate([jnp.tile(params["bt"], (Nb, 1)),
                            jnp.tile(params["bv"], (Nb, 1))], axis=0)  # (2*Nb*C, 1)
    s2b = jnp.tile(params["s2"], (Nb, 1))                    # (Nb*C, 1)
    h2b = jnp.tile(params["h2"], (Nb, 1))                    # (Nb*C, 1)

    # ---- fixed pooling / expansion matrices (host-built constants) ----
    pool = np.zeros((TV, T + V), np.float32)
    rt = np.zeros((T + V, TV), np.float32)
    rv = np.zeros((T + V, TV), np.float32)
    for t in range(T):
        for v in range(V):
            k = t * V + v
            pool[k, t] = 1.0 / V          # mean over V  -> columns [0, T)
            pool[k, T + v] = 1.0 / T      # mean over T  -> columns [T, T+V)
            rt[t, k] = 1.0                # broadcast z_t over V
            rv[T + v, k] = 1.0            # broadcast z_v over T
    pool = jnp.asarray(pool, dtype=mat_dtype)
    rt = jnp.asarray(rt, dtype=mat_dtype)
    rv = jnp.asarray(rv, dtype=mat_dtype)

    x_flat = x.reshape(N, C, TV)          # lane-dense; free for contiguous NCHW

    kernel = functools.partial(_stja_kernel, Nb=Nb, C=C, T=T, V=V)

    def const2(shape):
        return pl.BlockSpec(shape, lambda i: (0, 0))

    out_flat = pl.pallas_call(
        kernel,
        out_shape=jax.ShapeDtypeStruct((N, C, TV), x.dtype),
        grid_spec=pltpu.PrefetchScalarGridSpec(
            num_scalar_prefetch=0,
            grid=grid,
            in_specs=[
                pl.BlockSpec((Nb, C, TV), lambda i: (i, 0, 0)),
                const2((TV, T + V)),
                const2((T + V, TV)),
                const2((T + V, TV)),
                const2((Nb * inner, Nb * C)),
                const2((Nb * inner, 1)),
                const2((2 * Nb * C, Nb * inner)),
                const2((2 * Nb * C, 1)),
                const2((Nb * C, 1)),
                const2((Nb * C, 1)),
            ],
            out_specs=pl.BlockSpec((Nb, C, TV), lambda i: (i, 0, 0))),
        compiler_params=pltpu.CompilerParams(
            dimension_semantics=("parallel",),
            vmem_limit_bytes=32 * 1024 * 1024),
    )(x_flat, pool, rt, rv, w1b, b1b, wtvb, btvb, s2b, h2b)

    return out_flat.reshape(N, C, T, V)


def reference_stja(x, p):
    """Pure-JAX reference of the same forward (for correctness check)."""
    x = x.astype(jnp.float32)
    N, C, T, V = x.shape
    x_t = x.mean(axis=3)                                       # (N, C, T)
    x_v = x.mean(axis=2)                                       # (N, C, V)
    m = jnp.concatenate([x_t, x_v], axis=2)                    # (N, C, T+V)
    y = jnp.einsum("ic,nck->nik", p["w1"], m) + p["b1"][None]
    y = y * p["s1"][None] + p["h1"][None]
    y = y * jnp.clip(y + 3.0, 0.0, 6.0) / 6.0
    y_t, y_v = y[:, :, :T], y[:, :, T:]
    z_t = jax.nn.sigmoid(jnp.einsum("ci,nik->nck", p["wt"], y_t) + p["bt"][None])
    z_v = jax.nn.sigmoid(jnp.einsum("ci,nik->nck", p["wv"], y_v) + p["bv"][None])
    att = z_t[:, :, :, None] * z_v[:, :, None, :]              # (N, C, T, V)
    xm = x * att
    bn = xm * p["s2"][None, :, :, None] + p["h2"][None, :, :, None]
    return jnp.maximum(bn + x, 0.0)


def make_params(key, C, inner, eps=1e-5):
    ks = jax.random.split(key, 16)
    f32 = jnp.float32

    w1 = jax.random.normal(ks[0], (inner, C), f32) * 0.3
    b1 = jax.random.normal(ks[1], (inner, 1), f32) * 0.1
    wt = jax.random.normal(ks[2], (C, inner), f32) * 0.3
    bt = jax.random.normal(ks[3], (C, 1), f32) * 0.1
    wv = jax.random.normal(ks[4], (C, inner), f32) * 0.3
    bv = jax.random.normal(ks[5], (C, 1), f32) * 0.1

    # BatchNorm2d(inner) inside fcn (inference mode) -> fold to scale/shift
    g1 = 1.0 + 0.1 * jax.random.normal(ks[6], (inner, 1), f32)
    be1 = 0.05 * jax.random.normal(ks[7], (inner, 1), f32)
    mu1 = 0.02 * jax.random.normal(ks[8], (inner, 1), f32)
    var1 = 0.9 + 0.2 * jax.random.uniform(ks[9], (inner, 1), f32)
    s1 = g1 / jnp.sqrt(var1 + eps)
    h1 = be1 - mu1 * s1

    # Outer BatchNorm2d(C) of Attention_Layer (inference mode)
    g2 = 1.0 + 0.1 * jax.random.normal(ks[10], (C, 1), f32)
    be2 = 0.05 * jax.random.normal(ks[11], (C, 1), f32)
    mu2 = 0.02 * jax.random.normal(ks[12], (C, 1), f32)
    var2 = 0.9 + 0.2 * jax.random.uniform(ks[13], (C, 1), f32)
    s2 = g2 / jnp.sqrt(var2 + eps)
    h2 = be2 - mu2 * s2

    return dict(w1=w1, b1=b1, s1=s1, h1=h1,
                wt=wt, bt=bt, wv=wv, bv=bv,
                s2=s2, h2=h2)


if __name__ == "__main__":
    # Small shapes: N=2 sequences, C=16 channels, T=16 frames, V=8 joints.
    N, C, T, V = 2, 16, 16, 8
    reduct_ratio = 4
    inner = C // reduct_ratio

    key = jax.random.PRNGKey(0)
    kx, kp = jax.random.split(key)
    x = jax.random.normal(kx, (N, C, T, V), jnp.float32)
    params = make_params(kp, C, inner)

    out = attention_layer_stja(x, params)
    out = jax.block_until_ready(out)

    ref = jax.block_until_ready(reference_stja(x, params))
    np.testing.assert_allclose(np.asarray(out), np.asarray(ref),
                               rtol=1e-4, atol=1e-4)

    print("KERNEL_OK")
</pallas_src>

<mosaic_0001>
module attributes {stable_mosaic.version = 11 : i64} {
  func.func @_stja_kernel(%arg0: i32, %arg1: memref<2x16x128xf32, #tpu.memory_space<vmem>>, %arg2: memref<128x24xf32, #tpu.memory_space<vmem>>, %arg3: memref<24x128xf32, #tpu.memory_space<vmem>>, %arg4: memref<24x128xf32, #tpu.memory_space<vmem>>, %arg5: memref<8x32xf32, #tpu.memory_space<vmem>>, %arg6: memref<8x1xf32, #tpu.memory_space<vmem>>, %arg7: memref<64x8xf32, #tpu.memory_space<vmem>>, %arg8: memref<64x1xf32, #tpu.memory_space<vmem>>, %arg9: memref<32x1xf32, #tpu.memory_space<vmem>>, %arg10: memref<32x1xf32, #tpu.memory_space<vmem>>, %arg11: memref<2x16x128xf32, #tpu.memory_space<vmem>>) attributes {dimension_semantics = [#tpu.dimension_semantics<parallel>], iteration_bounds = array<i64: 1>, scalar_prefetch = 0 : i64, scratch_operands = 0 : i64, tpu.core_type = #tpu.core_type<tc>, window_params = [{transform_indices = @transform_0, window_bounds = array<i64: 2, 16, 128>}, {pipeline_mode = #tpu.pipeline_mode<synchronous>, transform_indices = @transform_1, window_bounds = array<i64: 128, 24>}, {pipeline_mode = #tpu.pipeline_mode<synchronous>, transform_indices = @transform_2, window_bounds = array<i64: 24, 128>}, {pipeline_mode = #tpu.pipeline_mode<synchronous>, transform_indices = @transform_3, window_bounds = array<i64: 24, 128>}, {pipeline_mode = #tpu.pipeline_mode<synchronous>, transform_indices = @transform_4, window_bounds = array<i64: 8, 32>}, {pipeline_mode = #tpu.pipeline_mode<synchronous>, transform_indices = @transform_5, window_bounds = array<i64: 8, 1>}, {pipeline_mode = #tpu.pipeline_mode<synchronous>, transform_indices = @transform_6, window_bounds = array<i64: 64, 8>}, {pipeline_mode = #tpu.pipeline_mode<synchronous>, transform_indices = @transform_7, window_bounds = array<i64: 64, 1>}, {pipeline_mode = #tpu.pipeline_mode<synchronous>, transform_indices = @transform_8, window_bounds = array<i64: 32, 1>}, {pipeline_mode = #tpu.pipeline_mode<synchronous>, transform_indices = @transform_9, window_bounds = array<i64: 32, 1>}, {transform_indices = @transform_10, window_bounds = array<i64: 2, 16, 128>}]} {
    %c0 = arith.constant 0 : index
    %c0_0 = arith.constant 0 : index
    %c0_1 = arith.constant 0 : index
    %0 = vector.load %arg1[%c0, %c0_0, %c0_1] : memref<2x16x128xf32, #tpu.memory_space<vmem>>, vector<2x16x128xf32>
    %1 = vector.shape_cast %0 : vector<2x16x128xf32> to vector<32x128xf32>
    %c0_2 = arith.constant 0 : index
    %c0_3 = arith.constant 0 : index
    %2 = vector.load %arg2[%c0_2, %c0_3] : memref<128x24xf32, #tpu.memory_space<vmem>>, vector<128x24xf32>
    %cst = arith.constant dense<0.000000e+00> : vector<32x24xf32>
    %3 = tpu.matmul %1, %2, %cst {dimension_numbers = #tpu.dot_dimension_numbers<[1], [0], [0], [1], [0, 0, 1, 1], [], []>} : vector<32x128xf32>, vector<128x24xf32>, vector<32x24xf32> -> vector<32x24xf32>
    %c0_4 = arith.constant 0 : index
    %c0_5 = arith.constant 0 : index
    %4 = vector.load %arg5[%c0_4, %c0_5] : memref<8x32xf32, #tpu.memory_space<vmem>>, vector<8x32xf32>
    %cst_6 = arith.constant dense<0.000000e+00> : vector<8x24xf32>
    %5 = tpu.matmul %4, %3, %cst_6 {dimension_numbers = #tpu.dot_dimension_numbers<[1], [0], [0], [1], [0, 0, 1, 1], [], []>} : vector<8x32xf32>, vector<32x24xf32>, vector<8x24xf32> -> vector<8x24xf32>
    %c0_7 = arith.constant 0 : index
    %c0_8 = arith.constant 0 : index
    %6 = vector.load %arg6[%c0_7, %c0_8] : memref<8x1xf32, #tpu.memory_space<vmem>>, vector<8x1xf32>
    %7 = vector.broadcast %6 : vector<8x1xf32> to vector<8x24xf32>
    %8 = arith.addf %5, %7 : vector<8x24xf32>
    %cst_9 = arith.constant 3.000000e+00 : f32
    %9 = vector.broadcast %cst_9 : f32 to vector<8x24xf32>
    %10 = arith.addf %8, %9 : vector<8x24xf32>
    %cst_10 = arith.constant 0.000000e+00 : f32
    %cst_11 = arith.constant 6.000000e+00 : f32
    %11 = vector.broadcast %cst_10 : f32 to vector<8x24xf32>
    %12 = arith.maximumf %11, %10 : vector<8x24xf32>
    %13 = vector.broadcast %cst_11 : f32 to vector<8x24xf32>
    %14 = arith.minimumf %13, %12 : vector<8x24xf32>
    %15 = arith.mulf %8, %14 : vector<8x24xf32>
    %cst_12 = arith.constant 0.166666672 : f32
    %16 = vector.broadcast %cst_12 : f32 to vector<8x24xf32>
    %17 = arith.mulf %15, %16 : vector<8x24xf32>
    %c0_13 = arith.constant 0 : index
    %c0_14 = arith.constant 0 : index
    %18 = vector.load %arg7[%c0_13, %c0_14] : memref<64x8xf32, #tpu.memory_space<vmem>>, vector<64x8xf32>
    %cst_15 = arith.constant dense<0.000000e+00> : vector<64x24xf32>
    %19 = tpu.matmul %18, %17, %cst_15 {dimension_numbers = #tpu.dot_dimension_numbers<[1], [0], [0], [1], [0, 0, 1, 1], [], []>} : vector<64x8xf32>, vector<8x24xf32>, vector<64x24xf32> -> vector<64x24xf32>
    %c0_16 = arith.constant 0 : index
    %c0_17 = arith.constant 0 : index
    %20 = vector.load %arg8[%c0_16, %c0_17] : memref<64x1xf32, #tpu.memory_space<vmem>>, vector<64x1xf32>
    %21 = vector.broadcast %20 : vector<64x1xf32> to vector<64x24xf32>
    %22 = arith.addf %19, %21 : vector<64x24xf32>
    %23 = arith.negf %22 : vector<64x24xf32>
    %24 = math.exp %23 : vector<64x24xf32>
    %cst_18 = arith.constant 1.000000e+00 : f32
    %25 = vector.broadcast %cst_18 : f32 to vector<64x24xf32>
    %26 = arith.addf %25, %24 : vector<64x24xf32>
    %27 = arith.divf %25, %26 : vector<64x24xf32>
    %28 = vector.extract_strided_slice %27 {offsets = [0, 0], sizes = [32, 24], strides = [1, 1]} : vector<64x24xf32> to vector<32x24xf32>
    %c0_19 = arith.constant 0 : index
    %c0_20 = arith.constant 0 : index
    %29 = vector.load %arg3[%c0_19, %c0_20] : memref<24x128xf32, #tpu.memory_space<vmem>>, vector<24x128xf32>
    %cst_21 = arith.constant dense<0.000000e+00> : vector<32x128xf32>
    %30 = tpu.matmul %28, %29, %cst_21 {dimension_numbers = #tpu.dot_dimension_numbers<[1], [0], [0], [1], [0, 0, 1, 1], [], []>} : vector<32x24xf32>, vector<24x128xf32>, vector<32x128xf32> -> vector<32x128xf32>
    %31 = vector.extract_strided_slice %27 {offsets = [32, 0], sizes = [32, 24], strides = [1, 1]} : vector<64x24xf32> to vector<32x24xf32>
    %c0_22 = arith.constant 0 : index
    %c0_23 = arith.constant 0 : index
    %32 = vector.load %arg4[%c0_22, %c0_23] : memref<24x128xf32, #tpu.memory_space<vmem>>, vector<24x128xf32>
    %cst_24 = arith.constant dense<0.000000e+00> : vector<32x128xf32>
    %33 = tpu.matmul %31, %32, %cst_24 {dimension_numbers = #tpu.dot_dimension_numbers<[1], [0], [0], [1], [0, 0, 1, 1], [], []>} : vector<32x24xf32>, vector<24x128xf32>, vector<32x128xf32> -> vector<32x128xf32>
    %34 = arith.mulf %30, %33 : vector<32x128xf32>
    %35 = arith.mulf %1, %34 : vector<32x128xf32>
    %c0_25 = arith.constant 0 : index
    %c0_26 = arith.constant 0 : index
    %36 = vector.load %arg9[%c0_25, %c0_26] : memref<32x1xf32, #tpu.memory_space<vmem>>, vector<32x1xf32>
    %37 = vector.broadcast %36 : vector<32x1xf32> to vector<32x128xf32>
    %38 = arith.mulf %35, %37 : vector<32x128xf32>
    %c0_27 = arith.constant 0 : index
    %c0_28 = arith.constant 0 : index
    %39 = vector.load %arg10[%c0_27, %c0_28] : memref<32x1xf32, #tpu.memory_space<vmem>>, vector<32x1xf32>
    %40 = vector.broadcast %39 : vector<32x1xf32> to vector<32x128xf32>
    %41 = arith.addf %38, %40 : vector<32x128xf32>
    %42 = arith.addf %41, %1 : vector<32x128xf32>
    %cst_29 = arith.constant 0.000000e+00 : f32
    %43 = vector.broadcast %cst_29 : f32 to vector<32x128xf32>
    %44 = arith.maximumf %42, %43 : vector<32x128xf32>
    %45 = vector.shape_cast %44 : vector<32x128xf32> to vector<2x16x128xf32>
    %c0_30 = arith.constant 0 : index
    %c0_31 = arith.constant 0 : index
    %c0_32 = arith.constant 0 : index
    %46 = vector.load %arg11[%c0_30, %c0_31, %c0_32] : memref<2x16x128xf32, #tpu.memory_space<vmem>>, vector<2x16x128xf32>
    tpu.vector_store %arg11[%c0_30, %c0_31, %c0_32], %45 {strides = array<i32>} : memref<2x16x128xf32, #tpu.memory_space<vmem>>, vector<2x16x128xf32>,
    return
  }
  func.func @transform_0(%arg0: i32) -> (i32, i32, i32) {
    %c0_i32 = arith.constant 0 : i32
    %c0_i32_0 = arith.constant 0 : i32
    %c0_i32_1 = arith.constant 0 : i32
    return %arg0, %c0_i32, %c0_i32_0 : i32, i32, i32
  }
  func.func @transform_1(%arg0: i32) -> (i32, i32) {
    %c0_i32 = arith.constant 0 : i32
    %c0_i32_0 = arith.constant 0 : i32
    %c0_i32_1 = arith.constant 0 : i32
    return %c0_i32, %c0_i32_0 : i32, i32
  }
  func.func @transform_2(%arg0: i32) -> (i32, i32) {
    %c0_i32 = arith.constant 0 : i32
    %c0_i32_0 = arith.constant 0 : i32
    %c0_i32_1 = arith.constant 0 : i32
    return %c0_i32, %c0_i32_0 : i32, i32
  }
  func.func @transform_3(%arg0: i32) -> (i32, i32) {
    %c0_i32 = arith.constant 0 : i32
    %c0_i32_0 = arith.constant 0 : i32
    %c0_i32_1 = arith.constant 0 : i32
    return %c0_i32, %c0_i32_0 : i32, i32
  }
  func.func @transform_4(%arg0: i32) -> (i32, i32) {
    %c0_i32 = arith.constant 0 : i32
    %c0_i32_0 = arith.constant 0 : i32
    %c0_i32_1 = arith.constant 0 : i32
    return %c0_i32, %c0_i32_0 : i32, i32
  }
  func.func @transform_5(%arg0: i32) -> (i32, i32) {
    %c0_i32 = arith.constant 0 : i32
    %c0_i32_0 = arith.constant 0 : i32
    %c0_i32_1 = arith.constant 0 : i32
    return %c0_i32, %c0_i32_0 : i32, i32
  }
  func.func @transform_6(%arg0: i32) -> (i32, i32) {
    %c0_i32 = arith.constant 0 : i32
    %c0_i32_0 = arith.constant 0 : i32
    %c0_i32_1 = arith.constant 0 : i32
    return %c0_i32, %c0_i32_0 : i32, i32
  }
  func.func @transform_7(%arg0: i32) -> (i32, i32) {
    %c0_i32 = arith.constant 0 : i32
    %c0_i32_0 = arith.constant 0 : i32
    %c0_i32_1 = arith.constant 0 : i32
    return %c0_i32, %c0_i32_0 : i32, i32
  }
  func.func @transform_8(%arg0: i32) -> (i32, i32) {
    %c0_i32 = arith.constant 0 : i32
    %c0_i32_0 = arith.constant 0 : i32
    %c0_i32_1 = arith.constant 0 : i32
    return %c0_i32, %c0_i32_0 : i32, i32
  }
  func.func @transform_9(%arg0: i32) -> (i32, i32) {
    %c0_i32 = arith.constant 0 : i32
    %c0_i32_0 = arith.constant 0 : i32
    %c0_i32_1 = arith.constant 0 : i32
    return %c0_i32, %c0_i32_0 : i32, i32
  }
  func.func @transform_10(%arg0: i32) -> (i32, i32, i32) {
    %c0_i32 = arith.constant 0 : i32
    %c0_i32_0 = arith.constant 0 : i32
    %c0_i32_1 = arith.constant 0 : i32
    return %arg0, %c0_i32, %c0_i32_0 : i32, i32, i32
  }
}

</mosaic_0001>

<bundles_post_ra>
// kernel: tpu_custom_call.1
= control target key start
LH: loop header
LB: loop body
LE: loop exit
PB: predicated region body
PF: predicated region fallthrough
CT: control target
= control target key end

     0   :  { %s1295_s0 = inlined_call_operand.vmem [shape: f32[2,16,128], index: 0, kind: input, shape index: {}]   ;;  %s1296_s1 = inlined_call_operand.vmem [shape: f32[128,24], index: 1, kind: input, shape index: {}]   ;;  %s1297_s2 = inlined_call_operand.vmem [shape: f32[24,128], index: 2, kind: input, shape index: {}]   ;;  %s1298_s3 = inlined_call_operand.vmem [shape: f32[24,128], index: 3, kind: input, shape index: {}]   ;;  %s1299_s4 = inlined_call_operand.vmem [shape: f32[8,32], index: 4, kind: input, shape index: {}]   ;;  %s1300_s5 = inlined_call_operand.vmem [shape: f32[8,1], index: 5, kind: input, shape index: {}]   ;;  %s1301_s6 = inlined_call_operand.vmem [shape: f32[64,8], index: 6, kind: input, shape index: {}]   ;;  %s1302_s7 = inlined_call_operand.vmem [shape: f32[64,1], index: 7, kind: input, shape index: {}]   ;;  %s1303_s8 = inlined_call_operand.vmem [shape: f32[32,1], index: 8, kind: input, shape index: {}]   ;;  %s1304_s9 = inlined_call_operand.vmem [shape: f32[32,1], index: 9, kind: input, shape index: {}]   ;;  %s1305_s10 = inlined_call_operand.hbm [shape: f32[2,16,128], index: 10, kind: output, shape index: {}]  }
   0x1   :  { %v40_v0 = vld [vmem:[%s1296_s1] sm:$0xff]  ;;  %v41_v1 = vld [vmem:[%s1296_s1 + $0x8] sm:$0xff]  ;;  %v42_v2 = vld [vmem:[%s1296_s1 + $0x10] sm:$0xff] }
   0x2   :  { %v914_v3 = vpack.c.bf16 %v41_v1, %v40_v0  ;;  %v43_v4 = vld [vmem:[%s1296_s1 + $0x18] sm:$0xff]  ;;  %v44_v6 = vld [vmem:[%s1296_s1 + $0x20] sm:$0xff]  ;;  %v45_v7 = vld [vmem:[%s1296_s1 + $0x28] sm:$0xff] }
   0x3   :  { %v918_v5 = vpack.c.bf16 %v43_v4, %v42_v2  ;;  %v922_v8 = vpack.c.bf16 %v45_v7, %v44_v6  ;;  %v1108_v9 = vld [vmem:[%s1295_s0] sm:$0xff]  ;;  %v46_v10 = vld [vmem:[%s1296_s1 + $0x30] sm:$0xff]  ;;  %v47_v11 = vld [vmem:[%s1296_s1 + $0x38] sm:$0xff] }
   0x4   :  { %915 = vmatprep.subr.bf16.mxu0 %v914_v3  ;;  %859 = vmatprep.mubr.f32.mxu0 %v1108_v9 }
   0x5   :  { %917 = vmatpush3.bf16.msra.mxu0 %v914_v3 }
   0x6   :  { %919 = vmatprep.subr.bf16.mxu0 %v918_v5 }
   0x7   :  { %15 = vsyncpa [#allocation3], 0  ;;  %v926_v12 = vpack.c.bf16 %v47_v11, %v46_v10  ;;  %v48_v13 = vld [vmem:[%s1296_s1 + $0x40] sm:$0xff]  ;;  %v49_v14 = vld [vmem:[%s1296_s1 + $0x48] sm:$0xff]  ;;  %v1025_v28 = vmov 0.0|0.0   ;;  %vm1026_vm0 = vmmov 0  }
   0x8   :  { %v930_v15 = vpack.c.bf16 %v49_v14, %v48_v13  ;;  %v50_v16 = vld [vmem:[%s1296_s1 + $0x50] sm:$0xff]  ;;  %v51_v17 = vld [vmem:[%s1296_s1 + $0x58] sm:$0xff]  ;;  %v52_v19 = vld [vmem:[%s1296_s1 + $0x60] sm:$0xff]  ;;  %946 = vmatprep.subr.bf16.mxu1 %v1025_v28  ;;  %v1027_v29 = vmov 0.0   ;;  %v1028_v31 = vmov 0   ;;  %vm148_vm1 = vcmask 261120  }
   0x9   :  { %921 = vmatpush3.bf16.msra.mxu0 %v918_v5  ;;  %v934_v18 = vpack.c.bf16 %v51_v17, %v50_v16  ;;  %v53_v20 = vld [vmem:[%s1296_s1 + $0x68] sm:$0xff]  ;;  %v54_v22 = vld [vmem:[%s1296_s1 + $0x70] sm:$0xff]  ;;  %v55_v23 = vld [vmem:[%s1296_s1 + $0x78] sm:$0xff]  ;;  %873 = vmatprep.mubr.msk.f32.mxu1 %vm1026_vm0, %v1027_v29  ;;  %vm283_vm2 = vcmask 64512   ;;  %vm464_vm3 = vcmask 195584  }
   0xa   :  { %923 = vmatprep.subr.bf16.mxu0 %v922_v8  ;;  %v938_v21 = vpack.c.bf16 %v53_v20, %v52_v19  ;;  %v942_v24 = vpack.c.bf16 %v55_v23, %v54_v22  ;;  %v1144_v25 = vld [vmem:[%s1295_s0 + $0x8] sm:$0xff]  ;;  %v1149_v26 = vld [vmem:[%s1295_s0 + $0x10] sm:$0xff]  ;;  %v1156_v27 = vld [vmem:[%s1295_s0 + $0x18] sm:$0xff]  ;;  %967 = vset.pattern.permute.xlu0 %v1028_v31 }
   0xb   :  { %v142_v30 = vld [vmem:[%s1300_s5] sm:$0xff]  ;;  %968 = vset.pattern.permute.xlu1 %v1028_v31  ;;  %v238_v33 = vld [vmem:[%s1302_s7 + $0x18] sm:$0xff]  ;;  %v240_v34 = vld [vmem:[%s1302_s7 + $0x28] sm:$0xff] }
   0xc   :  { %145 = vperm.xlu0 %967, %v142_v30   ;;  %v235_v32 = vld [vmem:[%s1302_s7] sm:$0xff]  ;;  %v242_v35 = vld [vmem:[%s1302_s7 + $0x38] sm:$0xff]  ;;  %v671_v36 = vld [vmem:[%s1303_s8 + $0x8] sm:$0xff] }
   0xd   :  { %925 = vmatpush3.bf16.msra.mxu0 %v922_v8  ;;  %v673_v37 = vld [vmem:[%s1303_s8 + $0x18] sm:$0xff]  ;;  %v699_v38 = vld [vmem:[%s1304_s9 + $0x8] sm:$0xff]  ;;  %v141_v46 = vld [vmem:[%s1299_s4] sm:$0xff] }
   0xe   :  { %927 = vmatprep.subr.bf16.mxu0 %v926_v12  ;;  %v701_v39 = vld [vmem:[%s1304_s9 + $0x18] sm:$0xff]  ;;  %v227_v47 = vld [vmem:[%s1301_s6] sm:$0xff]  ;;  %v236_v48 = vld [vmem:[%s1302_s7 + $0x8] sm:$0xff] }
   0xf   :  { %250 = vperm.xlu1 %968, %v236_v48   ;;  %v237_v49 = vld [vmem:[%s1302_s7 + $0x10] sm:$0xff]  ;;  %v239_v50 = vld [vmem:[%s1302_s7 + $0x20] sm:$0xff]  ;;  %v228_v1 = vld [vmem:[%s1301_s6 + $0x8] sm:$0xff] }
  0x10   :  { %245 = vperm.xlu0 %967, %v235_v32   ;;  %v241_v51 = vld [vmem:[%s1302_s7 + $0x30] sm:$0xff]  ;;  %v670_v52 = vld [vmem:[%s1303_s8] sm:$0xff]  ;;  %v230_v3 = vld [vmem:[%s1301_s6 + $0x18] sm:$0xff] }
  0x11   :  { %929 = vmatpush3.bf16.msra.mxu0 %v926_v12  ;;  %v672_v53 = vld [vmem:[%s1303_s8 + $0x10] sm:$0xff]  ;;  %v698_v54 = vld [vmem:[%s1304_s9] sm:$0xff]  ;;  %v232_v5 = vld [vmem:[%s1301_s6 + $0x28] sm:$0xff] }
  0x12   :  { %931 = vmatprep.subr.bf16.mxu0 %v930_v15  ;;  %v700_v55 = vld [vmem:[%s1304_s9 + $0x10] sm:$0xff]  ;;  %v231_v4 = vld [vmem:[%s1301_s6 + $0x20] sm:$0xff]  ;;  %v234_v7 = vld [vmem:[%s1301_s6 + $0x38] sm:$0xff] }
  0x13   :  { %255 = vperm.xlu1 %968, %v237_v49   ;;  %v229_v2 = vld [vmem:[%s1301_s6 + $0x10] sm:$0xff]  ;;  %v461_v8 = vld [vmem:[%s1297_s2] sm:$0xff]  ;;  %v462_v10 = vld [vmem:[%s1297_s2 + $0x8] sm:$0xff] }
  0x14   :  { %260 = vperm.xlu0 %967, %v238_v33   ;;  %v233_v6 = vld [vmem:[%s1301_s6 + $0x30] sm:$0xff]  ;;  %v952_v11 = vpack.c.bf16 %v462_v10, %v461_v8  ;;  %v562_v13 = vld [vmem:[%s1298_s3] sm:$0xff]  ;;  %v563_v14 = vld [vmem:[%s1298_s3 + $0x8] sm:$0xff] }
  0x15   :  { %933 = vmatpush3.bf16.msra.mxu0 %v930_v15  ;;  %v463_v12 = vld [vmem:[%s1297_s2 + $0x10] sm:$0xff]  ;;  %v1260_v15 = vpack.c.bf16 %v563_v14, %v562_v13 }
  0x16   :  { %935 = vmatprep.subr.bf16.mxu0 %v934_v18 }
  0x17   :  { %265 = vperm.xlu1 %968, %v239_v50  }
  0x18   :  { %270 = vperm.xlu0 %967, %v240_v34  }
  0x19   :  { %937 = vmatpush3.bf16.msra.mxu0 %v934_v18 }
  0x1a   :  { %939 = vmatprep.subr.bf16.mxu0 %v938_v21 }
  0x1b   :  { %275 = vperm.xlu1 %968, %v241_v51  }
  0x1c   :  { %280 = vperm.xlu0 %967, %v242_v35  }
  0x1d   :  { %941 = vmatpush3.bf16.msra.mxu0 %v938_v21 }
  0x1e   :  { %943 = vmatprep.subr.bf16.mxu0 %v942_v24 }
  0x1f   :  { %676 = vperm.xlu1 %968, %v670_v52  }
  0x20   :  { %681 = vperm.xlu0 %967, %v671_v36  }
  0x21   :  { %945 = vmatpush3.bf16.msra.mxu0 %v942_v24 }
  0x23   :  { %686 = vperm.xlu1 %968, %v672_v53  }
  0x24   :  { %860 = vmatmul.mubr.f32.vlgmr.msra.gmra.mrb[0].mxu0 %v1144_v25  ;;  %691 = vperm.xlu0 %967, %v673_v37  }
  0x25   :  { %862 = vmatprep.mubr.f32.mxu0 %v1149_v26 }
  0x27   :  { %704 = vperm.xlu1 %968, %v698_v54  }
  0x28   :  { %863 = vmatmul.mubr.f32.gmra.mrb[2].mxu0 %v1156_v27  ;;  %709 = vperm.xlu0 %967, %v699_v38  }
  0x2b   :  { %714 = vperm.xlu1 %968, %v700_v55  }
  0x2c   :  { %719 = vperm.xlu0 %967, %v701_v39  }
  0x8b   :  { %v146_v56 = vpop.permute.xlu0 %145 }
  0x8e   :  { %v251_v17 = vpop.permute.xlu1 %250 }
  0x8f   :  { %v246_v16 = vpop.permute.xlu0 %245 }
  0x92   :  { %v256_v20 = vpop.permute.xlu1 %255 }
  0x93   :  { %v261_v18 = vpop.permute.xlu0 %260 }
  0x96   :  { %v266_v34 = vpop.permute.xlu1 %265 }
  0x97   :  { %v271_v32 = vpop.permute.xlu0 %270 }
  0xf7   :  { %v861_v40 = vpop.f32.mrb[0].mxu0 }
  0xf8   :  { %v122_v41 = vpop.f32.mrb[1].mxu0 }
  0xf9   :  { %v947_v42 = vpack.c.bf16 %v861_v40, %v122_v41 }
  0xfb   :  { %v864_v43 = vpop.f32.mrb[2].mxu0  ;;  %948 = vmatpush3.bf16.msra.mxu1 %v947_v42  ;;  %v281_v42 = vpop.permute.xlu0 %280 }
  0xfc   :  { %v132_v44 = vpop.f32.mrb[3].mxu0  ;;  %949 = vmatprep.subr.bf16.mxu1 %v1025_v28 }
  0xfd   :  { %v950_v45 = vpack.c.bf16 %v864_v43, %v132_v44 }
  0xff   :  { %951 = vmatpush3.bf16.msra.mxu1 %v950_v45  ;;  %v276_v45 = vpop.permute.xlu1 %275 }
 0x102   :  { %874 = vmatmul.mubr.msk.f32.vlgmr.msra.gmra.mrb[0].mxu1 %vm148_vm1, %v141_v46 }
 0x103   :  { %878 = vmatprep.mubr.msk.f32.mxu1 %vm283_vm2, %v227_v47 }
 0x1d5   :  { %v218_v57 = vpop.f32.mrb[0].mxu1 }
 0x1d6   :  { %v219_v58 = vadd.f32 %v218_v57, %v146_v56  ;;  %v875_v59 = vpop.f32.mrb[1].mxu1 }
 0x1d8   :  { %v222_v60 = vadd.f32 3.0, %v219_v58 }
 0x1da   :  { %v223_v61 = vmax.f32 %v222_v60, 0.0 }
 0x1dc   :  { %v224_v62 = vmin.f32 %v223_v61, 6.0 }
 0x1de   :  { %v225_v63 = vmul.f32 %v224_v62, %v219_v58 }
 0x1e0   :  { %v226_v0 = vmul.f32 0.16666667, %v225_v63 }
 0x1e2   :  { %876 = vmatprep.subr.mxu1 %v226_v0 }
 0x1e3   :  { %877 = vmatpush3.msra.mxu1 %v226_v0 }
 0x1e4   :  { %879 = vmatmul.mubr.msk.f32.vlgmr.msra.gmra.mrb[2].mxu1 %vm283_vm2, %v228_v1  ;;  %953 = vmatprep.subr.bf16.mxu1 %v952_v11 }
 0x1e5   :  { %881 = vmatprep.mubr.msk.f32.mxu1 %vm283_vm2, %v229_v2  ;;  %955 = vmatpush3.bf16.msra.mxu1 %v952_v11 }
 0x1e6   :  { %894 = vmatprep.subr.mxu1 %v463_v12 }
 0x1e8   :  { %882 = vmatmul.mubr.msk.f32.gmra.mrb[4].mxu1 %vm283_vm2, %v230_v3 }
 0x1e9   :  { %884 = vmatprep.mubr.msk.f32.mxu1 %vm283_vm2, %v231_v4  ;;  %895 = vmatpush3.msra.mxu1 %v463_v12  ;;  %v564_v4 = vld [vmem:[%s1298_s3 + $0x10] sm:$0xff]  ;;  %s1029_s3 = smov [#allocation2]  }
 0x1ea   :  { %957 = vmatprep.subr.bf16.mxu1 %v1260_v15  ;;  %s743_s21 = sshll.u32 %s1029_s3, 4  ;;  %s744_s21 = int_to_ptr.vmem [resolvable:$true] %s743_s21 }
 0x1eb   :  { %s1001_s22 = scalar_lea.vmem %s744_s21, 512  ;;  %p1006_p1 = scmp.lt.s32.totalorder %s744_s21, %s744_s21 }
 0x1ec   :  { %885 = vmatmul.mubr.msk.f32.gmra.mrb[6].mxu1 %vm283_vm2, %v232_v5  ;;  %p1002_p0 = scmp.ne.s32.totalorder %s744_s21, %s1001_s22  ;;  %p1007_p2 = scmp.lt.s32.totalorder %s1001_s22, %s1001_s22 }
 0x1ed   :  { %887 = vmatprep.mubr.msk.f32.mxu1 %vm283_vm2, %v233_v6 }
 0x1ee   :  { %p1008_p3 = por %p1007_p2, %p1006_p1 }
 0x1f0   :  { %888 = vmatmul.mubr.msk.f32.gmra.mrb[8].mxu1 %vm283_vm2, %v234_v7  ;;  %p1009_p4 = pnand %p1008_p3, %p1002_p0 }
 0x2b7   :  { %v880_v19 = vpop.f32.mrb[2].mxu1 }
 0x2b8   :  { %v380_v21 = vadd.f32 %v880_v19, %v251_v17  ;;  %v374_v22 = vpop.f32.mrb[3].mxu1 }
 0x2b9   :  { %v375_v23 = vadd.f32 %v374_v22, %v246_v16  ;;  %v677_v16 = vpop.permute.xlu1 %676 }
 0x2ba   :  { %v764_v24 = vmul.f32 -1.442695, %v380_v21 }
 0x2bb   :  { %v763_v28 = vmul.f32 -1.442695, %v375_v23  ;;  %v883_v29 = vpop.f32.mrb[4].mxu1 }
 0x2bc   :  { %969 = vpow2.f32 %v764_v24  ;;  %v390_v30 = vadd.f32 %v883_v29, %v261_v18  ;;  %v384_v31 = vpop.f32.mrb[5].mxu1 }
 0x2bd   :  { %971 = vpow2.f32 %v763_v28  ;;  %v385_v33 = vadd.f32 %v384_v31, %v256_v20  ;;  %v687_v21 = vpop.permute.xlu1 %686 }
 0x2be   :  { %v766_v35 = vmul.f32 -1.442695, %v390_v30 }
 0x2bf   :  { %v765_v36 = vmul.f32 -1.442695, %v385_v33  ;;  %v886_v37 = vpop.f32.mrb[6].mxu1 }
 0x2c0   :  { %973 = vpow2.f32 %v766_v35  ;;  %v400_v38 = vadd.f32 %v886_v37, %v271_v32  ;;  %v394_v39 = vpop.f32.mrb[7].mxu1 }
 0x2c1   :  { %975 = vpow2.f32 %v765_v36  ;;  %v395_v40 = vadd.f32 %v394_v39, %v266_v34  ;;  %v705_v34 = vpop.permute.xlu1 %704 }
 0x2c2   :  { %v768_v41 = vmul.f32 -1.442695, %v400_v38 }
 0x2c3   :  { %v767_v43 = vmul.f32 -1.442695, %v395_v40  ;;  %v889_v44 = vpop.f32.mrb[8].mxu1 }
 0x2c4   :  { %977 = vpow2.f32 %v768_v41  ;;  %v410_v46 = vadd.f32 %v889_v44, %v281_v42  ;;  %v404_v47 = vpop.f32.mrb[9].mxu1 }
 0x2c5   :  { %979 = vpow2.f32 %v767_v43  ;;  %v405_v48 = vadd.f32 %v404_v47, %v276_v45 }
 0x2c6   :  { %v970_v49 = vpop.eup %969  ;;  %v770_v50 = vmul.f32 -1.442695, %v410_v46 }
 0x2c7   :  { %v972_v51 = vpop.eup %971  ;;  %v438_v52 = vadd.f32 1.0, %v970_v49  ;;  %v769_v53 = vmul.f32 -1.442695, %v405_v48  ;;  %v715_v49 = vpop.permute.xlu1 %714 }
 0x2c8   :  { %v437_v54 = vadd.f32 1.0, %v972_v51  ;;  %981 = vpow2.f32 %v770_v50 }
 0x2c9   :  { %983 = vrcp.f32 %v438_v52 }
 0x2ca   :  { %v974_v55 = vpop.eup %973  ;;  %985 = vrcp.f32 %v437_v54 }
 0x2cb   :  { %v976_v56 = vpop.eup %975  ;;  %v440_v57 = vadd.f32 1.0, %v974_v55  ;;  %987 = vpow2.f32 %v769_v53 }
 0x2cc   :  { %v439_v58 = vadd.f32 1.0, %v976_v56 }
 0x2ce   :  { %v978_v59 = vpop.eup %977  ;;  %989 = vrcp.f32 %v439_v58 }
 0x2cf   :  { %v980_v60 = vpop.eup %979  ;;  %991 = vrcp.f32 %v440_v57  ;;  %v442_v61 = vadd.f32 1.0, %v978_v59 }
 0x2d0   :  { %v441_v62 = vadd.f32 1.0, %v980_v60 }
 0x2d2   :  { %v982_v63 = vpop.eup %981  ;;  %993 = vrcp.f32 %v441_v62 }
 0x2d3   :  { %v984_v0 = vpop.eup %983  ;;  %995 = vrcp.f32 %v442_v61  ;;  %v444_v3 = vadd.f32 1.0, %v982_v63 }
 0x2d4   :  { %v986_v1 = vpop.eup %985 }
 0x2d5   :  { %v988_v2 = vpop.eup %987  ;;  %896 = vmatprep.mubr.msk.f32.mxu1 %vm464_vm3, %v986_v1 }
 0x2d6   :  { %v443_v5 = vadd.f32 1.0, %v988_v2  ;;  %897 = vmatmul.mubr.msk.f32.vlgmr.msra.gmra.mrb[10].mxu1 %vm464_vm3, %v984_v0 }
 0x2d7   :  { %959 = vmatpush3.bf16.msra.mxu1 %v1260_v15  ;;  %v682_v15 = vpop.permute.xlu0 %681 }
 0x2d8   :  { %v990_v6 = vpop.eup %989  ;;  %997 = vrcp.f32 %v443_v5  ;;  %906 = vmatprep.subr.mxu1 %v564_v4 }
 0x2d9   :  { %v992_v7 = vpop.eup %991  ;;  %999 = vrcp.f32 %v444_v3  ;;  %899 = vmatprep.mubr.msk.f32.mxu1 %vm464_vm3, %v990_v6 }
 0x2da   :  { %900 = vmatmul.mubr.msk.f32.gmra.mrb[12].mxu1 %vm464_vm3, %v992_v7 }
 0x2db   :  { %907 = vmatpush3.msra.mxu1 %v564_v4  ;;  %v692_v19 = vpop.permute.xlu0 %691 }
 0x2dc   :  { %v994_v8 = vpop.eup %993 }
 0x2dd   :  { %v996_v10 = vpop.eup %995  ;;  %908 = vmatprep.mubr.msk.f32.mxu1 %vm464_vm3, %v994_v8 }
 0x2de   :  { %909 = vmatmul.mubr.msk.f32.vlgmr.msra.gmra.mrb[14].mxu1 %vm464_vm3, %v996_v10 }
 0x2df   :  { %v710_v31 = vpop.permute.xlu0 %709 }
 0x2e2   :  { %v998_v11 = vpop.eup %997 }
 0x2e3   :  { %v1000_v12 = vpop.eup %999  ;;  %911 = vmatprep.mubr.msk.f32.mxu1 %vm464_vm3, %v998_v11  ;;  %v720_v46 = vpop.permute.xlu0 %719 }
 0x2e4   :  { %912 = vmatmul.mubr.msk.f32.gmra.mrb[16].mxu1 %vm464_vm3, %v1000_v12 }
 0x3a9   :  { %v898_v13 = vpop.f32.mrb[10].mxu1 }
 0x3aa   :  { %v543_v14 = vpop.f32.mrb[11].mxu1 }
 0x3ad   :  { %v901_v17 = vpop.f32.mrb[12].mxu1 }
 0x3ae   :  { %v553_v18 = vpop.f32.mrb[13].mxu1 }
 0x3b1   :  { %v910_v20 = vpop.f32.mrb[14].mxu1 }
 0x3b2   :  { %v663_v22 = vmul.f32 %v910_v20, %v898_v13  ;;  %v643_v23 = vpop.f32.mrb[15].mxu1 }
 0x3b3   :  { %v662_v24 = vmul.f32 %v643_v23, %v543_v14 }
 0x3b4   :  { %v667_v28 = vmul.f32 %v663_v22, %v1144_v25 }
 0x3b5   :  { %v666_v29 = vmul.f32 %v662_v24, %v1108_v9 }
 0x3b6   :  { %v695_v30 = vmul.f32 %v682_v15, %v667_v28 }
 0x3b7   :  { %v694_v32 = vmul.f32 %v677_v16, %v666_v29  ;;  %v913_v33 = vpop.f32.mrb[16].mxu1 }
 0x3b8   :  { %v723_v35 = vadd.f32 %v710_v31, %v695_v30  ;;  %v665_v36 = vmul.f32 %v913_v33, %v901_v17  ;;  %v653_v37 = vpop.f32.mrb[17].mxu1 }
 0x3b9   :  { %v722_v38 = vadd.f32 %v705_v34, %v694_v32  ;;  %v664_v39 = vmul.f32 %v653_v37, %v553_v18 }
 0x3ba   :  { %v727_v40 = vadd.f32 %v723_v35, %v1144_v25  ;;  %v669_v41 = vmul.f32 %v665_v36, %v1156_v27 }
 0x3bb   :  { %v726_v42 = vadd.f32 %v722_v38, %v1108_v9  ;;  %v668_v43 = vmul.f32 %v664_v39, %v1149_v26 }
 0x3bc   :  { %v731_v44 = vmax.f32 %v727_v40, 0.0  ;;  %v697_v45 = vmul.f32 %v692_v19, %v669_v41 }
 0x3bd   :  { %v730_v47 = vmax.f32 %v726_v42, 0.0  ;;  %v696_v48 = vmul.f32 %v687_v21, %v668_v43 }
 0x3be   :  { %735 = vst [vmem:[#allocation2 + $0x8] sm:$0xff] %v731_v44  ;;  %v725_v50 = vadd.f32 %v720_v46, %v697_v45 }
 0x3bf   :  { %734 = vst [vmem:[#allocation2] sm:$0xff] %v730_v47  ;;  %v724_v51 = vadd.f32 %v715_v49, %v696_v48 }
 0x3c0   :  { %v729_v25 = vadd.f32 %v725_v50, %v1156_v27 }
 0x3c1   :  { %v728_v52 = vadd.f32 %v724_v51, %v1149_v26 }
 0x3c2   :  { %v733_v53 = vmax.f32 %v729_v25, 0.0 }
 0x3c3   :  { %v732_v9 = vmax.f32 %v728_v52, 0.0 }
 0x3c4   :  { %737 = vst [vmem:[#allocation2 + $0x18] sm:$0xff] %v733_v53 }
 0x3c5   :  { %736 = vst [vmem:[#allocation2 + $0x10] sm:$0xff] %v732_v9 }
 0x3c6   :  { %1012 = shalt.err (!%p1009_p4)
}
 0x3c7   :  { %s1013_s8 = scalar_lea.hbm %s1305_s10, 512 }
 0x3c8   :  { %p1014_p5 = scmp.ne.s32.totalorder %s1305_s10, %s1013_s8  ;;  %p1017_p6 = scmp.lt.u32.totalorder %s1013_s8, %s1305_s10 }
 0x3ca   :  { %p1019_p7 = pnand %p1017_p6, %p1014_p5 }
 0x3cc   :  { %1022 = shalt.err (!%p1019_p7)
}
 0x3cd   :  { %s1030_s27 = smov 128   ;;  %s1031_s28 = smov 8  }
 0x3ce   :  { %749 = dma.vmem_to_hbm [thread:$0]  %s744_s21, 512, %s1305_s10, [#allocation3], %s1030_s27, %s1030_s27, %s1031_s28  }
 0x3cf   :  { %1023 = dma.done.wait [#allocation3], 512  }
 0x3d0   :  { %1024 = vsyncadd [#allocation3], 4294966784 }
 0x3d1   :  { %753 = vsyncpa [#allocation3], 1 }

</bundles_post_ra>
